<compile_context>
chip_gen: v5e
topology: v5e:2x2
jax: 0.10.0
libtpu: 0.0.40
codegen_flags: <defaults>
</compile_context>

<pallas_src>
import jax
import jax.numpy as jnp
from jax.experimental import pallas as pl
from jax.experimental.pallas import tpu as pltpu


# ------------------------------ fused kernel ------------------------------


def _make_fused_decoder_kernel(dim_x, dd, h_pad, n_blk, mdl):
    """kernel(z, Wz1, Wz2, Wz3, Pz, bz, W1s, W2s, W3s, bs, [PAs, PBs,] o).

    All activations are (features, batch_tile): batch on the 128-lane axis.
    """
    ncut = dim_x - dd

    def mm(a, b):
        return jnp.dot(a, b, preferred_element_type=jnp.float32)

    def kernel(z_ref, Wz1, Wz2, Wz3, Pz, bz, W1s, W2s, W3s, bs, *rest):
        o_ref = rest[-1]
        if n_blk > 1:
            PAs, PBs = rest[0], rest[1]

        # ---- first nflow layer (block-0 permutation pre-folded into Wz3/Pz) --
        z = z_ref[...]                                   # (dim_z, tb)
        bzv = bz[...]                                    # (2*h_pad + dim_x, 1)
        h = jnp.maximum(mm(Wz1[...], z) + bzv[:h_pad], 0.0)
        h = jnp.maximum(mm(Wz2[...], h) + bzv[h_pad:2 * h_pad], 0.0)
        # xp == P0 @ concat([z, MLP(z)])  (both concat and gather folded away)
        xp = mm(Pz[...], z) + mm(Wz3[...], h) + bzv[2 * h_pad:]   # (dim_x, tb)

        # ---- GIN affine-coupling blocks (statically unrolled) ----------------
        trans = x1 = None
        for blk in range(n_blk):
            if blk > 0:
                # permutation of concat([trans, x1]) fused as two matmuls
                xp = mm(PAs[blk - 1], trans) + mm(PBs[blk - 1], x1)
            x1 = xp[:dd, :]                              # sublane-aligned split
            x2 = xp[dd:, :]
            bv = bs[blk]                                 # (2*h_pad + 2*ncut, 1)
            hh = jnp.maximum(mm(W1s[blk], x1) + bv[:h_pad], 0.0)
            hh = jnp.maximum(mm(W2s[blk], hh) + bv[h_pad:2 * h_pad], 0.0)
            st = mm(W3s[blk], hh) + bv[2 * h_pad:]       # (2*ncut, tb), GIN-folded
            s_full = st[:ncut, :]     # log-scales; last row already == -sum(rest)
            t = st[ncut:, :]
            trans = x2 * jnp.exp(s_full) + t             # (ncut, tb)

        # ---- poisson head (fused epilogue); output rows = concat([trans, x1])
        if mdl == "poisson":
            o_ref[:ncut, :] = jnp.clip(jax.nn.softplus(trans), 1e-7, 1e7)
            o_ref[ncut:, :] = jnp.clip(jax.nn.softplus(x1), 1e-7, 1e7)
        else:
            # TODO(synk): gaussian observation head of Decoder_Nflow not modeled.
            o_ref[:ncut, :] = trans
            o_ref[ncut:, :] = x1

    return kernel


# ------------------------------ init helpers ------------------------------


def _init_linear_t(key, d_in, d_out):
    """nn.Linear-style init, returned transposed: W (d_out, d_in), b (d_out, 1)."""
    kw, kb = jax.random.split(key)
    bound = 1.0 / float(d_in) ** 0.5
    w = jax.random.uniform(kw, (d_out, d_in), jnp.float32, -bound, bound)
    b = jax.random.uniform(kb, (d_out, 1), jnp.float32, -bound, bound)
    return w, b


def _init_mlp_t(key, d_in, d_hid, d_out, h_pad):
    """3-layer MLP (relu, relu, linear); weights transposed, hidden zero-padded
    to h_pad (multiple of 8 only) -- identical function, aligned sublanes."""
    key, k1, k2, k3 = jax.random.split(key, 4)
    w1, b1 = _init_linear_t(k1, d_in, d_hid)
    w2, b2 = _init_linear_t(k2, d_hid, d_hid)
    w3, b3 = _init_linear_t(k3, d_hid, d_out)
    pad = h_pad - d_hid
    w1 = jnp.pad(w1, ((0, pad), (0, 0)))
    b1 = jnp.pad(b1, ((0, pad), (0, 0)))
    w2 = jnp.pad(w2, ((0, pad), (0, pad)))
    b2 = jnp.pad(b2, ((0, pad), (0, 0)))
    w3 = jnp.pad(w3, ((0, 0), (0, pad)))
    return (w1, b1, w2, b2, w3, b3), key


def _gin_fold_matrix(ncut):
    """G (2*ncut, 2*ncut-1): G @ st has rows [0:ncut] = GIN log-scales (last row
    = -sum of the first ncut-1) and rows [ncut:] = translations."""
    G = jnp.zeros((2 * ncut, 2 * ncut - 1), jnp.float32)
    if ncut > 1:
        i = jnp.arange(ncut - 1)
        G = G.at[i, i].set(1.0)
        G = G.at[ncut - 1, :ncut - 1].set(-1.0)
    j = jnp.arange(ncut)
    G = G.at[ncut + j, ncut - 1 + j].set(1.0)
    return G


def _pick_lane_tile(B, max_tile=2048):
    """Batch (lane-axis) tiling: one grid step for small B; 2048-lane tiles
    (+ padding to a tile multiple) for large B."""
    if B <= max_tile:
        return B, B          # block == full array: single step, always legal
    n_tiles = (B + max_tile - 1) // max_tile
    return max_tile, n_tiles * max_tile


def _const_index_map(ndim):
    zeros = (0,) * ndim
    return lambda i: zeros


# ------------------------------ decoder class -----------------------------


class PallasVAEDecoder:
    """Pallas port of VAEDecoder (pi-VAE GIN-flow decoder, poisson model)."""

    def __init__(self, dim_x, dim_z, dim_u, n_blk=None,
                 min_gen_nodes_decoder_nflow=30, mdl="poisson", seed=0):
        assert n_blk is not None and n_blk >= 1
        self.dim_x, self.dim_z, self.mdl, self.n_blk = dim_x, dim_z, mdl, n_blk
        self.dd = dim_x // 2
        self.ncut = dim_x - self.dd
        h = max(min_gen_nodes_decoder_nflow, dim_x // 4)
        self.h_pad = ((h + 7) // 8) * 8

        # dim_u only feeds the label prior in pi-VAE; the decoder ignores it.
        # TODO(synk): add a trained-PyTorch state-dict loading path (transpose +
        # hidden padding + P0/GIN folding); weights here are random init.

        key = jax.random.PRNGKey(seed)
        eye = jnp.eye(dim_x, dtype=jnp.float32)
        G = _gin_fold_matrix(self.ncut)

        # --- first nflow layer, block-0 permutation folded into its last layer.
        (fw1, fb1, fw2, fb2, fw3, fb3), key = _init_mlp_t(
            key, dim_z, h, dim_x - dim_z, self.h_pad)
        key, kp = jax.random.split(key)
        perm0 = jax.random.permutation(kp, dim_x)
        P0 = eye[perm0]                       # transposed perm: xp_t = P0 @ x_t
        Pz = P0[:, :dim_z]
        Wz3 = P0[:, dim_z:] @ fw3
        bz = jnp.concatenate([fb1, fb2, P0[:, dim_z:] @ fb3], axis=0)

        # --- GIN coupling blocks: per-kind stacked weight slabs.
        perms, ref_blocks = [perm0], []
        W1l, W2l, W3l, bl, PAl, PBl = [], [], [], [], [], []
        for blk in range(n_blk):
            if blk >= 1:
                key, kp = jax.random.split(key)
                perm = jax.random.permutation(kp, dim_x)
                perms.append(perm)
                P = eye[perm]
                PAl.append(P[:, :self.ncut])   # applies to prev block's `trans`
                PBl.append(P[:, self.ncut:])   # applies to prev block's `x1`
            (w1, b1, w2, b2, w3, b3), key = _init_mlp_t(
                key, self.dd, h, 2 * self.ncut - 1, self.h_pad)
            ref_blocks.append((w1, b1, w2, b2, w3, b3))
            W1l.append(w1)
            W2l.append(w2)
            W3l.append(G @ w3)                           # GIN -sum(s) row folded
            bl.append(jnp.concatenate([b1, b2, G @ b3], axis=0))

        self._params = [fw1, fw2, Wz3, Pz, bz,
                        jnp.stack(W1l), jnp.stack(W2l), jnp.stack(W3l),
                        jnp.stack(bl)]
        if n_blk > 1:
            self._params += [jnp.stack(PAl), jnp.stack(PBl)]

        # raw (unfolded) params kept for the pure-JAX reference check
        self._ref_first = (fw1, fb1, fw2, fb2, fw3, fb3)
        self._ref_blocks = ref_blocks
        self._ref_perms = perms

        self._kernel = _make_fused_decoder_kernel(
            dim_x, self.dd, self.h_pad, n_blk, mdl)

    # -------------------------- pallas_call wrapper -----------------------

    def _vmem_limit_bytes(self, tb):
        w = sum(int(p.size) for p in self._params) * 4
        io = (self.dim_z + self.dim_x) * tb * 4
        act = 12 * max(self.h_pad, self.dim_x) * tb * 4     # in-kernel temporaries
        need = 2 * w + 2 * io + act
        return int(min(32 * 1024 * 1024, max(16 * 1024 * 1024, 2 * need)))

    def _cost_estimate(self, Bp):
        hp, dx, dz = self.h_pad, self.dim_x, self.dim_z
        dd, nc, nb = self.dd, self.ncut, self.n_blk
        per_row = 2 * (dz * hp + hp * hp + hp * dx + dz * dx)       # first layer
        per_row += nb * 2 * (dd * hp + hp * hp + hp * 2 * nc)       # block MLPs
        per_row += max(nb - 1, 0) * 2 * dx * dx                     # fused perms
        w_bytes = sum(int(p.size) for p in self._params) * 4
        return pl.CostEstimate(
            flops=int(Bp) * per_row,
            transcendentals=int(Bp) * (nb * nc + 2 * dx),
            bytes_accessed=int(Bp) * (dz + dx) * 4 + w_bytes)

    def __call__(self, z_input):
        B, dz = z_input.shape
        assert dz == self.dim_z
        # Lane-dense transposed layout: batch on the 128-lane axis.  Boundary
        # transpose / pad / slice are cheap wrapper-side XLA layout plumbing.
        z_t = z_input.T.astype(jnp.float32)                   # (dim_z, B)
        tb, Bp = _pick_lane_tile(B)
        if Bp != B:
            z_t = jnp.pad(z_t, ((0, 0), (0, Bp - B)))
        grid = (Bp // tb,)

        in_specs = [pl.BlockSpec((self.dim_z, tb), lambda i: (0, i))]
        # Weight slabs: full-array blocks, constant index maps -> DMA'd once and
        # resident in VMEM across all grid steps.
        in_specs += [pl.BlockSpec(p.shape, _const_index_map(p.ndim))
                     for p in self._params]
        out_specs = pl.BlockSpec((self.dim_x, tb), lambda i: (0, i))

        out_t = pl.pallas_call(
            self._kernel,
            out_shape=jax.ShapeDtypeStruct((self.dim_x, Bp), jnp.float32),
            grid=grid,
            in_specs=in_specs,
            out_specs=out_specs,
            compiler_params=pltpu.CompilerParams(
                dimension_semantics=("parallel",),
                vmem_limit_bytes=self._vmem_limit_bytes(tb)),
            cost_estimate=self._cost_estimate(Bp),
        )(z_t, *self._params)

        return out_t[:, :B].T                                  # (B, dim_x)

    # ------------------------ pure-JAX reference --------------------------

    def reference_forward(self, z):
        """Unfused, batch-major reference mirroring the PyTorch Decoder_Nflow
        math (explicit gathers / concats) using the same underlying weights."""
        def mlp(x, w1, b1, w2, b2, w3, b3):
            h = jnp.maximum(x @ w1.T + b1.T, 0.0)
            h = jnp.maximum(h @ w2.T + b2.T, 0.0)
            return h @ w3.T + b3.T

        x = jnp.concatenate([z, mlp(z, *self._ref_first)], axis=-1)
        for blk in range(self.n_blk):
            xp = x[:, self._ref_perms[blk]]
            x1, x2 = xp[:, :self.dd], xp[:, self.dd:]
            st = mlp(x1, *self._ref_blocks[blk])
            s = st[:, :self.ncut - 1]
            t = st[:, self.ncut - 1:]
            s_full = jnp.concatenate([s, -jnp.sum(s, -1, keepdims=True)], -1)
            x = jnp.concatenate([x2 * jnp.exp(s_full) + t, x1], -1)
        if self.mdl == "poisson":
            x = jnp.clip(jax.nn.softplus(x), 1e-7, 1e7)
        return x


# ----------------------------------- main -----------------------------------

if __name__ == "__main__":
    dim_x, dim_z, dim_u = 32, 4, 3
    batch = 64    # small batch -> single grid step (no per-step overhead)

    decoder = PallasVAEDecoder(dim_x=dim_x, dim_z=dim_z, dim_u=dim_u,
                               n_blk=2, min_gen_nodes_decoder_nflow=30,
                               mdl="poisson", seed=0)

    key = jax.random.PRNGKey(0)
    z_input = jax.random.normal(key, (batch, dim_z), jnp.float32)

    fire_rate = jax.block_until_ready(decoder(z_input))

    assert fire_rate.shape == (batch, dim_x)
    assert bool(jnp.all(jnp.isfinite(fire_rate)))
    assert bool(jnp.all(fire_rate >= 1e-7)) and bool(jnp.all(fire_rate <= 1e7))

    # numerical check of the folded/transposed kernel vs. the unfused reference
    ref = jax.block_until_ready(decoder.reference_forward(z_input))
    assert bool(jnp.allclose(fire_rate, ref, rtol=5e-3, atol=1e-4)), (
        "max abs err = %g" % float(jnp.max(jnp.abs(fire_rate - ref))))

    print("KERNEL_OK")
</pallas_src>

<mosaic_0001>
module attributes {stable_mosaic.version = 11 : i64} {
  func.func @kernel(%arg0: i32, %arg1: memref<4x64xf32, #tpu.memory_space<vmem>>, %arg2: memref<32x4xf32, #tpu.memory_space<vmem>>, %arg3: memref<32x32xf32, #tpu.memory_space<vmem>>, %arg4: memref<32x32xf32, #tpu.memory_space<vmem>>, %arg5: memref<32x4xf32, #tpu.memory_space<vmem>>, %arg6: memref<96x1xf32, #tpu.memory_space<vmem>>, %arg7: memref<2x32x16xf32, #tpu.memory_space<vmem>>, %arg8: memref<2x32x32xf32, #tpu.memory_space<vmem>>, %arg9: memref<2x32x32xf32, #tpu.memory_space<vmem>>, %arg10: memref<2x96x1xf32, #tpu.memory_space<vmem>>, %arg11: memref<1x32x16xf32, #tpu.memory_space<vmem>>, %arg12: memref<1x32x16xf32, #tpu.memory_space<vmem>>, %arg13: memref<32x64xf32, #tpu.memory_space<vmem>>) attributes {dimension_semantics = [#tpu.dimension_semantics<parallel>], iteration_bounds = array<i64: 1>, scalar_prefetch = 0 : i64, scratch_operands = 0 : i64, tpu.core_type = #tpu.core_type<tc>, window_params = [{transform_indices = @transform_0, window_bounds = array<i64: 4, 64>}, {pipeline_mode = #tpu.pipeline_mode<synchronous>, transform_indices = @transform_1, window_bounds = array<i64: 32, 4>}, {pipeline_mode = #tpu.pipeline_mode<synchronous>, transform_indices = @transform_2, window_bounds = array<i64: 32, 32>}, {pipeline_mode = #tpu.pipeline_mode<synchronous>, transform_indices = @transform_3, window_bounds = array<i64: 32, 32>}, {pipeline_mode = #tpu.pipeline_mode<synchronous>, transform_indices = @transform_4, window_bounds = array<i64: 32, 4>}, {pipeline_mode = #tpu.pipeline_mode<synchronous>, transform_indices = @transform_5, window_bounds = array<i64: 96, 1>}, {pipeline_mode = #tpu.pipeline_mode<synchronous>, transform_indices = @transform_6, window_bounds = array<i64: 2, 32, 16>}, {pipeline_mode = #tpu.pipeline_mode<synchronous>, transform_indices = @transform_7, window_bounds = array<i64: 2, 32, 32>}, {pipeline_mode = #tpu.pipeline_mode<synchronous>, transform_indices = @transform_8, window_bounds = array<i64: 2, 32, 32>}, {pipeline_mode = #tpu.pipeline_mode<synchronous>, transform_indices = @transform_9, window_bounds = array<i64: 2, 96, 1>}, {pipeline_mode = #tpu.pipeline_mode<synchronous>, transform_indices = @transform_10, window_bounds = array<i64: 1, 32, 16>}, {pipeline_mode = #tpu.pipeline_mode<synchronous>, transform_indices = @transform_11, window_bounds = array<i64: 1, 32, 16>}, {transform_indices = @transform_12, window_bounds = array<i64: 32, 64>}]} {
    %c0 = arith.constant 0 : index
    %c0_0 = arith.constant 0 : index
    %0 = vector.load %arg1[%c0, %c0_0] : memref<4x64xf32, #tpu.memory_space<vmem>>, vector<4x64xf32>
    %c0_1 = arith.constant 0 : index
    %c0_2 = arith.constant 0 : index
    %1 = vector.load %arg6[%c0_1, %c0_2] : memref<96x1xf32, #tpu.memory_space<vmem>>, vector<96x1xf32>
    %c0_3 = arith.constant 0 : index
    %c0_4 = arith.constant 0 : index
    %2 = vector.load %arg2[%c0_3, %c0_4] : memref<32x4xf32, #tpu.memory_space<vmem>>, vector<32x4xf32>
    %cst = arith.constant dense<0.000000e+00> : vector<32x64xf32>
    %3 = tpu.matmul %2, %0, %cst {dimension_numbers = #tpu.dot_dimension_numbers<[1], [0], [0], [1], [0, 0, 1, 1], [], []>} : vector<32x4xf32>, vector<4x64xf32>, vector<32x64xf32> -> vector<32x64xf32>
    %4 = vector.extract_strided_slice %1 {offsets = [0, 0], sizes = [32, 1], strides = [1, 1]} : vector<96x1xf32> to vector<32x1xf32>
    %5 = vector.broadcast %4 : vector<32x1xf32> to vector<32x64xf32>
    %6 = arith.addf %3, %5 : vector<32x64xf32>
    %cst_5 = arith.constant 0.000000e+00 : f32
    %7 = vector.broadcast %cst_5 : f32 to vector<32x64xf32>
    %8 = arith.maximumf %6, %7 : vector<32x64xf32>
    %c0_6 = arith.constant 0 : index
    %c0_7 = arith.constant 0 : index
    %9 = vector.load %arg3[%c0_6, %c0_7] : memref<32x32xf32, #tpu.memory_space<vmem>>, vector<32x32xf32>
    %cst_8 = arith.constant dense<0.000000e+00> : vector<32x64xf32>
    %10 = tpu.matmul %9, %8, %cst_8 {dimension_numbers = #tpu.dot_dimension_numbers<[1], [0], [0], [1], [0, 0, 1, 1], [], []>} : vector<32x32xf32>, vector<32x64xf32>, vector<32x64xf32> -> vector<32x64xf32>
    %11 = vector.extract_strided_slice %1 {offsets = [32, 0], sizes = [32, 1], strides = [1, 1]} : vector<96x1xf32> to vector<32x1xf32>
    %12 = vector.broadcast %11 : vector<32x1xf32> to vector<32x64xf32>
    %13 = arith.addf %10, %12 : vector<32x64xf32>
    %cst_9 = arith.constant 0.000000e+00 : f32
    %14 = vector.broadcast %cst_9 : f32 to vector<32x64xf32>
    %15 = arith.maximumf %13, %14 : vector<32x64xf32>
    %c0_10 = arith.constant 0 : index
    %c0_11 = arith.constant 0 : index
    %16 = vector.load %arg5[%c0_10, %c0_11] : memref<32x4xf32, #tpu.memory_space<vmem>>, vector<32x4xf32>
    %cst_12 = arith.constant dense<0.000000e+00> : vector<32x64xf32>
    %17 = tpu.matmul %16, %0, %cst_12 {dimension_numbers = #tpu.dot_dimension_numbers<[1], [0], [0], [1], [0, 0, 1, 1], [], []>} : vector<32x4xf32>, vector<4x64xf32>, vector<32x64xf32> -> vector<32x64xf32>
    %c0_13 = arith.constant 0 : index
    %c0_14 = arith.constant 0 : index
    %18 = vector.load %arg4[%c0_13, %c0_14] : memref<32x32xf32, #tpu.memory_space<vmem>>, vector<32x32xf32>
    %cst_15 = arith.constant dense<0.000000e+00> : vector<32x64xf32>
    %19 = tpu.matmul %18, %15, %cst_15 {dimension_numbers = #tpu.dot_dimension_numbers<[1], [0], [0], [1], [0, 0, 1, 1], [], []>} : vector<32x32xf32>, vector<32x64xf32>, vector<32x64xf32> -> vector<32x64xf32>
    %20 = arith.addf %17, %19 : vector<32x64xf32>
    %21 = vector.extract_strided_slice %1 {offsets = [64, 0], sizes = [32, 1], strides = [1, 1]} : vector<96x1xf32> to vector<32x1xf32>
    %22 = vector.broadcast %21 : vector<32x1xf32> to vector<32x64xf32>
    %23 = arith.addf %20, %22 : vector<32x64xf32>
    %24 = vector.extract_strided_slice %23 {offsets = [0, 0], sizes = [16, 64], strides = [1, 1]} : vector<32x64xf32> to vector<16x64xf32>
    %25 = vector.extract_strided_slice %23 {offsets = [16, 0], sizes = [16, 64], strides = [1, 1]} : vector<32x64xf32> to vector<16x64xf32>
    %c0_16 = arith.constant 0 : index
    %c0_17 = arith.constant 0 : index
    %c0_18 = arith.constant 0 : index
    %26 = vector.load %arg10[%c0_16, %c0_17, %c0_18] : memref<2x96x1xf32, #tpu.memory_space<vmem>>, vector<1x96x1xf32>
    %27 = vector.shape_cast %26 : vector<1x96x1xf32> to vector<96x1xf32>
    %c0_19 = arith.constant 0 : index
    %c0_20 = arith.constant 0 : index
    %c0_21 = arith.constant 0 : index
    %28 = vector.load %arg7[%c0_19, %c0_20, %c0_21] : memref<2x32x16xf32, #tpu.memory_space<vmem>>, vector<1x32x16xf32>
    %29 = vector.shape_cast %28 : vector<1x32x16xf32> to vector<32x16xf32>
    %cst_22 = arith.constant dense<0.000000e+00> : vector<32x64xf32>
    %30 = tpu.matmul %29, %24, %cst_22 {dimension_numbers = #tpu.dot_dimension_numbers<[1], [0], [0], [1], [0, 0, 1, 1], [], []>} : vector<32x16xf32>, vector<16x64xf32>, vector<32x64xf32> -> vector<32x64xf32>
    %31 = vector.extract_strided_slice %27 {offsets = [0, 0], sizes = [32, 1], strides = [1, 1]} : vector<96x1xf32> to vector<32x1xf32>
    %32 = vector.broadcast %31 : vector<32x1xf32> to vector<32x64xf32>
    %33 = arith.addf %30, %32 : vector<32x64xf32>
    %cst_23 = arith.constant 0.000000e+00 : f32
    %34 = vector.broadcast %cst_23 : f32 to vector<32x64xf32>
    %35 = arith.maximumf %33, %34 : vector<32x64xf32>
    %c0_24 = arith.constant 0 : index
    %c0_25 = arith.constant 0 : index
    %c0_26 = arith.constant 0 : index
    %36 = vector.load %arg8[%c0_24, %c0_25, %c0_26] : memref<2x32x32xf32, #tpu.memory_space<vmem>>, vector<1x32x32xf32>
    %37 = vector.shape_cast %36 : vector<1x32x32xf32> to vector<32x32xf32>
    %cst_27 = arith.constant dense<0.000000e+00> : vector<32x64xf32>
    %38 = tpu.matmul %37, %35, %cst_27 {dimension_numbers = #tpu.dot_dimension_numbers<[1], [0], [0], [1], [0, 0, 1, 1], [], []>} : vector<32x32xf32>, vector<32x64xf32>, vector<32x64xf32> -> vector<32x64xf32>
    %39 = vector.extract_strided_slice %27 {offsets = [32, 0], sizes = [32, 1], strides = [1, 1]} : vector<96x1xf32> to vector<32x1xf32>
    %40 = vector.broadcast %39 : vector<32x1xf32> to vector<32x64xf32>
    %41 = arith.addf %38, %40 : vector<32x64xf32>
    %cst_28 = arith.constant 0.000000e+00 : f32
    %42 = vector.broadcast %cst_28 : f32 to vector<32x64xf32>
    %43 = arith.maximumf %41, %42 : vector<32x64xf32>
    %c0_29 = arith.constant 0 : index
    %c0_30 = arith.constant 0 : index
    %c0_31 = arith.constant 0 : index
    %44 = vector.load %arg9[%c0_29, %c0_30, %c0_31] : memref<2x32x32xf32, #tpu.memory_space<vmem>>, vector<1x32x32xf32>
    %45 = vector.shape_cast %44 : vector<1x32x32xf32> to vector<32x32xf32>
    %cst_32 = arith.constant dense<0.000000e+00> : vector<32x64xf32>
    %46 = tpu.matmul %45, %43, %cst_32 {dimension_numbers = #tpu.dot_dimension_numbers<[1], [0], [0], [1], [0, 0, 1, 1], [], []>} : vector<32x32xf32>, vector<32x64xf32>, vector<32x64xf32> -> vector<32x64xf32>
    %47 = vector.extract_strided_slice %27 {offsets = [64, 0], sizes = [32, 1], strides = [1, 1]} : vector<96x1xf32> to vector<32x1xf32>
    %48 = vector.broadcast %47 : vector<32x1xf32> to vector<32x64xf32>
    %49 = arith.addf %46, %48 : vector<32x64xf32>
    %50 = vector.extract_strided_slice %49 {offsets = [0, 0], sizes = [16, 64], strides = [1, 1]} : vector<32x64xf32> to vector<16x64xf32>
    %51 = vector.extract_strided_slice %49 {offsets = [16, 0], sizes = [16, 64], strides = [1, 1]} : vector<32x64xf32> to vector<16x64xf32>
    %52 = math.exp %50 : vector<16x64xf32>
    %53 = arith.mulf %25, %52 : vector<16x64xf32>
    %54 = arith.addf %53, %51 : vector<16x64xf32>
    %c0_33 = arith.constant 0 : index
    %c0_34 = arith.constant 0 : index
    %c0_35 = arith.constant 0 : index
    %55 = vector.load %arg11[%c0_33, %c0_34, %c0_35] : memref<1x32x16xf32, #tpu.memory_space<vmem>>, vector<1x32x16xf32>
    %56 = vector.shape_cast %55 : vector<1x32x16xf32> to vector<32x16xf32>
    %cst_36 = arith.constant dense<0.000000e+00> : vector<32x64xf32>
    %57 = tpu.matmul %56, %54, %cst_36 {dimension_numbers = #tpu.dot_dimension_numbers<[1], [0], [0], [1], [0, 0, 1, 1], [], []>} : vector<32x16xf32>, vector<16x64xf32>, vector<32x64xf32> -> vector<32x64xf32>
    %c0_37 = arith.constant 0 : index
    %c0_38 = arith.constant 0 : index
    %c0_39 = arith.constant 0 : index
    %58 = vector.load %arg12[%c0_37, %c0_38, %c0_39] : memref<1x32x16xf32, #tpu.memory_space<vmem>>, vector<1x32x16xf32>
    %59 = vector.shape_cast %58 : vector<1x32x16xf32> to vector<32x16xf32>
    %cst_40 = arith.constant dense<0.000000e+00> : vector<32x64xf32>
    %60 = tpu.matmul %59, %24, %cst_40 {dimension_numbers = #tpu.dot_dimension_numbers<[1], [0], [0], [1], [0, 0, 1, 1], [], []>} : vector<32x16xf32>, vector<16x64xf32>, vector<32x64xf32> -> vector<32x64xf32>
    %61 = arith.addf %57, %60 : vector<32x64xf32>
    %62 = vector.extract_strided_slice %61 {offsets = [0, 0], sizes = [16, 64], strides = [1, 1]} : vector<32x64xf32> to vector<16x64xf32>
    %63 = vector.extract_strided_slice %61 {offsets = [16, 0], sizes = [16, 64], strides = [1, 1]} : vector<32x64xf32> to vector<16x64xf32>
    %c1 = arith.constant 1 : index
    %c0_41 = arith.constant 0 : index
    %c0_42 = arith.constant 0 : index
    %64 = vector.load %arg10[%c1, %c0_41, %c0_42] : memref<2x96x1xf32, #tpu.memory_space<vmem>>, vector<1x96x1xf32>
    %65 = vector.shape_cast %64 : vector<1x96x1xf32> to vector<96x1xf32>
    %c1_43 = arith.constant 1 : index
    %c0_44 = arith.constant 0 : index
    %c0_45 = arith.constant 0 : index
    %66 = vector.load %arg7[%c1_43, %c0_44, %c0_45] : memref<2x32x16xf32, #tpu.memory_space<vmem>>, vector<1x32x16xf32>
    %67 = vector.shape_cast %66 : vector<1x32x16xf32> to vector<32x16xf32>
    %cst_46 = arith.constant dense<0.000000e+00> : vector<32x64xf32>
    %68 = tpu.matmul %67, %62, %cst_46 {dimension_numbers = #tpu.dot_dimension_numbers<[1], [0], [0], [1], [0, 0, 1, 1], [], []>} : vector<32x16xf32>, vector<16x64xf32>, vector<32x64xf32> -> vector<32x64xf32>
    %69 = vector.extract_strided_slice %65 {offsets = [0, 0], sizes = [32, 1], strides = [1, 1]} : vector<96x1xf32> to vector<32x1xf32>
    %70 = vector.broadcast %69 : vector<32x1xf32> to vector<32x64xf32>
    %71 = arith.addf %68, %70 : vector<32x64xf32>
    %cst_47 = arith.constant 0.000000e+00 : f32
    %72 = vector.broadcast %cst_47 : f32 to vector<32x64xf32>
    %73 = arith.maximumf %71, %72 : vector<32x64xf32>
    %c1_48 = arith.constant 1 : index
    %c0_49 = arith.constant 0 : index
    %c0_50 = arith.constant 0 : index
    %74 = vector.load %arg8[%c1_48, %c0_49, %c0_50] : memref<2x32x32xf32, #tpu.memory_space<vmem>>, vector<1x32x32xf32>
    %75 = vector.shape_cast %74 : vector<1x32x32xf32> to vector<32x32xf32>
    %cst_51 = arith.constant dense<0.000000e+00> : vector<32x64xf32>
    %76 = tpu.matmul %75, %73, %cst_51 {dimension_numbers = #tpu.dot_dimension_numbers<[1], [0], [0], [1], [0, 0, 1, 1], [], []>} : vector<32x32xf32>, vector<32x64xf32>, vector<32x64xf32> -> vector<32x64xf32>
    %77 = vector.extract_strided_slice %65 {offsets = [32, 0], sizes = [32, 1], strides = [1, 1]} : vector<96x1xf32> to vector<32x1xf32>
    %78 = vector.broadcast %77 : vector<32x1xf32> to vector<32x64xf32>
    %79 = arith.addf %76, %78 : vector<32x64xf32>
    %cst_52 = arith.constant 0.000000e+00 : f32
    %80 = vector.broadcast %cst_52 : f32 to vector<32x64xf32>
    %81 = arith.maximumf %79, %80 : vector<32x64xf32>
    %c1_53 = arith.constant 1 : index
    %c0_54 = arith.constant 0 : index
    %c0_55 = arith.constant 0 : index
    %82 = vector.load %arg9[%c1_53, %c0_54, %c0_55] : memref<2x32x32xf32, #tpu.memory_space<vmem>>, vector<1x32x32xf32>
    %83 = vector.shape_cast %82 : vector<1x32x32xf32> to vector<32x32xf32>
    %cst_56 = arith.constant dense<0.000000e+00> : vector<32x64xf32>
    %84 = tpu.matmul %83, %81, %cst_56 {dimension_numbers = #tpu.dot_dimension_numbers<[1], [0], [0], [1], [0, 0, 1, 1], [], []>} : vector<32x32xf32>, vector<32x64xf32>, vector<32x64xf32> -> vector<32x64xf32>
    %85 = vector.extract_strided_slice %65 {offsets = [64, 0], sizes = [32, 1], strides = [1, 1]} : vector<96x1xf32> to vector<32x1xf32>
    %86 = vector.broadcast %85 : vector<32x1xf32> to vector<32x64xf32>
    %87 = arith.addf %84, %86 : vector<32x64xf32>
    %88 = vector.extract_strided_slice %87 {offsets = [0, 0], sizes = [16, 64], strides = [1, 1]} : vector<32x64xf32> to vector<16x64xf32>
    %89 = vector.extract_strided_slice %87 {offsets = [16, 0], sizes = [16, 64], strides = [1, 1]} : vector<32x64xf32> to vector<16x64xf32>
    %90 = math.exp %88 : vector<16x64xf32>
    %91 = arith.mulf %63, %90 : vector<16x64xf32>
    %92 = arith.addf %91, %89 : vector<16x64xf32>
    %cst_57 = arith.constant 0.000000e+00 : f32
    %93 = vector.broadcast %cst_57 : f32 to vector<16x64xf32>
    %94 = arith.maximumf %92, %93 : vector<16x64xf32>
    %95 = vector.broadcast %cst_57 : f32 to vector<16x64xf32>
    %96 = arith.subf %92, %95 : vector<16x64xf32>
    %97 = arith.cmpf one, %96, %96 : vector<16x64xf32>
    %98 = vector.broadcast %cst_57 : f32 to vector<16x64xf32>
    %99 = arith.addf %92, %98 : vector<16x64xf32>
    %100 = math.absf %96 : vector<16x64xf32>
    %cst_58 = arith.constant 0.000000e+00 : f32
    %101 = vector.broadcast %cst_58 : f32 to vector<16x64xf32>
    %102 = arith.subf %101, %100 : vector<16x64xf32>
    %103 = math.exp %102 : vector<16x64xf32>
    %104 = math.log1p %103 : vector<16x64xf32>
    %105 = arith.addf %94, %104 : vector<16x64xf32>
    %106 = arith.select %97, %99, %105 : vector<16x64xi1>, vector<16x64xf32>
    %cst_59 = arith.constant 1.000000e-07 : f32
    %cst_60 = arith.constant 1.000000e+07 : f32
    %107 = vector.broadcast %cst_59 : f32 to vector<16x64xf32>
    %108 = arith.maximumf %107, %106 : vector<16x64xf32>
    %109 = vector.broadcast %cst_60 : f32 to vector<16x64xf32>
    %110 = arith.minimumf %109, %108 : vector<16x64xf32>
    %c0_61 = arith.constant 0 : index
    %c0_62 = arith.constant 0 : index
    %111 = vector.load %arg13[%c0_61, %c0_62] : memref<32x64xf32, #tpu.memory_space<vmem>>, vector<16x64xf32>
    tpu.vector_store %arg13[%c0_61, %c0_62], %110 {strides = array<i32>} : memref<32x64xf32, #tpu.memory_space<vmem>>, vector<16x64xf32>,
    %cst_63 = arith.constant 0.000000e+00 : f32
    %112 = vector.broadcast %cst_63 : f32 to vector<16x64xf32>
    %113 = arith.maximumf %62, %112 : vector<16x64xf32>
    %114 = vector.broadcast %cst_63 : f32 to vector<16x64xf32>
    %115 = arith.subf %62, %114 : vector<16x64xf32>
    %116 = arith.cmpf one, %115, %115 : vector<16x64xf32>
    %117 = vector.broadcast %cst_63 : f32 to vector<16x64xf32>
    %118 = arith.addf %62, %117 : vector<16x64xf32>
    %119 = math.absf %115 : vector<16x64xf32>
    %cst_64 = arith.constant 0.000000e+00 : f32
    %120 = vector.broadcast %cst_64 : f32 to vector<16x64xf32>
    %121 = arith.subf %120, %119 : vector<16x64xf32>
    %122 = math.exp %121 : vector<16x64xf32>
    %123 = math.log1p %122 : vector<16x64xf32>
    %124 = arith.addf %113, %123 : vector<16x64xf32>
    %125 = arith.select %116, %118, %124 : vector<16x64xi1>, vector<16x64xf32>
    %cst_65 = arith.constant 1.000000e-07 : f32
    %cst_66 = arith.constant 1.000000e+07 : f32
    %126 = vector.broadcast %cst_65 : f32 to vector<16x64xf32>
    %127 = arith.maximumf %126, %125 : vector<16x64xf32>
    %128 = vector.broadcast %cst_66 : f32 to vector<16x64xf32>
    %129 = arith.minimumf %128, %127 : vector<16x64xf32>
    %c16 = arith.constant 16 : index
    %c0_67 = arith.constant 0 : index
    %130 = vector.load %arg13[%c16, %c0_67] : memref<32x64xf32, #tpu.memory_space<vmem>>, vector<16x64xf32>
    tpu.vector_store %arg13[%c16, %c0_67], %129 {strides = array<i32>} : memref<32x64xf32, #tpu.memory_space<vmem>>, vector<16x64xf32>,
    return
  }
  func.func @transform_0(%arg0: i32) -> (i32, i32) {
    %c0_i32 = arith.constant 0 : i32
    %c0_i32_0 = arith.constant 0 : i32
    return %c0_i32, %arg0 : i32, i32
  }
  func.func @transform_1(%arg0: i32) -> (i32, i32) {
    %c0_i32 = arith.constant 0 : i32
    %c0_i32_0 = arith.constant 0 : i32
    %c0_i32_1 = arith.constant 0 : i32
    return %c0_i32, %c0_i32_0 : i32, i32
  }
  func.func @transform_2(%arg0: i32) -> (i32, i32) {
    %c0_i32 = arith.constant 0 : i32
    %c0_i32_0 = arith.constant 0 : i32
    %c0_i32_1 = arith.constant 0 : i32
    return %c0_i32, %c0_i32_0 : i32, i32
  }
  func.func @transform_3(%arg0: i32) -> (i32, i32) {
    %c0_i32 = arith.constant 0 : i32
    %c0_i32_0 = arith.constant 0 : i32
    %c0_i32_1 = arith.constant 0 : i32
    return %c0_i32, %c0_i32_0 : i32, i32
  }
  func.func @transform_4(%arg0: i32) -> (i32, i32) {
    %c0_i32 = arith.constant 0 : i32
    %c0_i32_0 = arith.constant 0 : i32
    %c0_i32_1 = arith.constant 0 : i32
    return %c0_i32, %c0_i32_0 : i32, i32
  }
  func.func @transform_5(%arg0: i32) -> (i32, i32) {
    %c0_i32 = arith.constant 0 : i32
    %c0_i32_0 = arith.constant 0 : i32
    %c0_i32_1 = arith.constant 0 : i32
    return %c0_i32, %c0_i32_0 : i32, i32
  }
  func.func @transform_6(%arg0: i32) -> (i32, i32, i32) {
    %c0_i32 = arith.constant 0 : i32
    %c0_i32_0 = arith.constant 0 : i32
    %c0_i32_1 = arith.constant 0 : i32
    %c0_i32_2 = arith.constant 0 : i32
    return %c0_i32, %c0_i32_0, %c0_i32_1 : i32, i32, i32
  }
  func.func @transform_7(%arg0: i32) -> (i32, i32, i32) {
    %c0_i32 = arith.constant 0 : i32
    %c0_i32_0 = arith.constant 0 : i32
    %c0_i32_1 = arith.constant 0 : i32
    %c0_i32_2 = arith.constant 0 : i32
    return %c0_i32, %c0_i32_0, %c0_i32_1 : i32, i32, i32
  }
  func.func @transform_8(%arg0: i32) -> (i32, i32, i32) {
    %c0_i32 = arith.constant 0 : i32
    %c0_i32_0 = arith.constant 0 : i32
    %c0_i32_1 = arith.constant 0 : i32
    %c0_i32_2 = arith.constant 0 : i32
    return %c0_i32, %c0_i32_0, %c0_i32_1 : i32, i32, i32
  }
  func.func @transform_9(%arg0: i32) -> (i32, i32, i32) {
    %c0_i32 = arith.constant 0 : i32
    %c0_i32_0 = arith.constant 0 : i32
    %c0_i32_1 = arith.constant 0 : i32
    %c0_i32_2 = arith.constant 0 : i32
    return %c0_i32, %c0_i32_0, %c0_i32_1 : i32, i32, i32
  }
  func.func @transform_10(%arg0: i32) -> (i32, i32, i32) {
    %c0_i32 = arith.constant 0 : i32
    %c0_i32_0 = arith.constant 0 : i32
    %c0_i32_1 = arith.constant 0 : i32
    %c0_i32_2 = arith.constant 0 : i32
    return %c0_i32, %c0_i32_0, %c0_i32_1 : i32, i32, i32
  }
  func.func @transform_11(%arg0: i32) -> (i32, i32, i32) {
    %c0_i32 = arith.constant 0 : i32
    %c0_i32_0 = arith.constant 0 : i32
    %c0_i32_1 = arith.constant 0 : i32
    %c0_i32_2 = arith.constant 0 : i32
    return %c0_i32, %c0_i32_0, %c0_i32_1 : i32, i32, i32
  }
  func.func @transform_12(%arg0: i32) -> (i32, i32) {
    %c0_i32 = arith.constant 0 : i32
    %c0_i32_0 = arith.constant 0 : i32
    return %c0_i32, %arg0 : i32, i32
  }
}

</mosaic_0001>

<bundles_post_ra>
// kernel: tpu_custom_call.1
= control target key start
LH: loop header
LB: loop body
LE: loop exit
PB: predicated region body
PF: predicated region fallthrough
CT: control target
= control target key end

     0   :  { %vm92_vm0 = vcmask 1043456   ;;  %v1088_v3 = vmov 0   ;;  %vm79_vm1 = vcmask 31744   ;;  %s1467_s0 = inlined_call_operand.vmem [shape: f32[4,64], index: 0, kind: input, shape index: {}]   ;;  %s1468_s1 = inlined_call_operand.vmem [shape: f32[32,4], index: 1, kind: input, shape index: {}]   ;;  %s1469_s2 = inlined_call_operand.vmem [shape: f32[32,32], index: 2, kind: input, shape index: {}]   ;;  %s1470_s3 = inlined_call_operand.vmem [shape: f32[32,32], index: 3, kind: input, shape index: {}]   ;;  %s1471_s4 = inlined_call_operand.vmem [shape: f32[32,4], index: 4, kind: input, shape index: {}]   ;;  %s1472_s5 = inlined_call_operand.vmem [shape: f32[96,1], index: 5, kind: input, shape index: {}]   ;;  %s1473_s6 = inlined_call_operand.vmem [shape: f32[2,32,16], index: 6, kind: input, shape index: {}]   ;;  %s1474_s7 = inlined_call_operand.vmem [shape: f32[2,32,32], index: 7, kind: input, shape index: {}]   ;;  %s1475_s8 = inlined_call_operand.vmem [shape: f32[2,32,32], index: 8, kind: input, shape index: {}]   ;;  %s1476_s9 = inlined_call_operand.vmem [shape: f32[2,96,1], index: 9, kind: input, shape index: {}]   ;;  %s1477_s10 = inlined_call_operand.vmem [shape: f32[1,32,16], index: 10, kind: input, shape index: {}]   ;;  %s1478_s11 = inlined_call_operand.vmem [shape: f32[1,32,16], index: 11, kind: input, shape index: {}]   ;;  %s1479_s12 = inlined_call_operand.hbm [shape: f32[32,64], index: 12, kind: output, shape index: {}]  }
   0x1   :  { %v42_v0 = vld [vmem:[%s1467_s0] sm:$0xf]  ;;  %v46_v1 = vld [vmem:[%s1472_s5 + $0x18] sm:$0xff]  ;;  %v44_v2 = vld [vmem:[%s1472_s5 + $0x8] sm:$0xff]  ;;  %1036 = vset.pattern.permute.xlu1 %v1088_v3  ;;  %1035 = vset.pattern.permute.xlu0 %v1088_v3 }
   0x2   :  { %v55_v4 = vld [vmem:[%s1468_s1] sm:$0xff]  ;;  %957 = vmatpush.msk.msra.mxu0 %vm92_vm0, %v42_v0  ;;  %76 = vperm.xlu0 %1035, %v46_v1  }
   0x3   :  { %66 = vperm.xlu1 %1036, %v44_v2   ;;  %958 = vmatmul.msk.f32.vlgmr.msra.gmra.mxu0 %vm79_vm1, %v55_v4 }
   0x4   :  { %1037 = vset.pattern.permute.xlu2 %v1088_v3  ;;  %970 = vmatpush.msk.msra.mxu3 %vm92_vm0, %v42_v0 }
   0x5   :  { %17 = vsyncpa [#allocation3], 0  ;;  %v45_v5 = vld [vmem:[%s1472_s5 + $0x10] sm:$0xff]  ;;  %v43_v6 = vld [vmem:[%s1472_s5] sm:$0xff]  ;;  %vm153_vm2 = vcmask 261120   ;;  %vm349_vm3 = vcmask 130048  }
   0x6   :  { %v56_v7 = vld [vmem:[%s1468_s1 + $0x8] sm:$0xff]  ;;  %v47_v9 = vld [vmem:[%s1472_s5 + $0x20] sm:$0xff]  ;;  %v57_v10 = vld [vmem:[%s1468_s1 + $0x10] sm:$0xff]  ;;  %vm894_vm6 = vcmask 523264  }
   0x7   :  { %v48_v8 = vld [vmem:[%s1472_s5 + $0x28] sm:$0xff]  ;;  %v51_v11 = vld [vmem:[%s1472_s5 + $0x40] sm:$0xff]  ;;  %v316_v12 = vld [vmem:[%s1476_s9 + $0x18] sm:$0xff] }
   0x8   :  { %v58_v13 = vld [vmem:[%s1468_s1 + $0x18] sm:$0xff]  ;;  %v314_v14 = vld [vmem:[%s1476_s9 + $0x8] sm:$0xff]  ;;  %v313_v15 = vld [vmem:[%s1476_s9] sm:$0xff] }
   0x9   :  { %v319_v16 = vld [vmem:[%s1476_s9 + $0x30] sm:$0xff]  ;;  %v318_v17 = vld [vmem:[%s1476_s9 + $0x28] sm:$0xff]  ;;  %v321_v19 = vld [vmem:[%s1476_s9 + $0x40] sm:$0xff] }
   0xa   :  { %71 = vperm.xlu0 %1035, %v45_v5   ;;  %v322_v18 = vld [vmem:[%s1476_s9 + $0x48] sm:$0xff]  ;;  %v53_v20 = vld [vmem:[%s1472_s5 + $0x50] sm:$0xff]  ;;  %v324_v21 = vld [vmem:[%s1476_s9 + $0x58] sm:$0xff] }
   0xb   :  { %61 = vperm.xlu1 %1036, %v43_v6   ;;  %959 = vmatmul.msk.f32.gmra.mxu0 %vm79_vm1, %v56_v7  ;;  %v998_v22 = vld [vmem:[%s1476_s9 + $0x78] sm:$0xff]  ;;  %v997_v23 = vld [vmem:[%s1476_s9 + $0x70] sm:$0xff]  ;;  %v995_v24 = vld [vmem:[%s1476_s9 + $0x60] sm:$0xff] }
   0xc   :  { %v1002_v25 = vld [vmem:[%s1476_s9 + $0x98] sm:$0xff]  ;;  %v1000_v26 = vld [vmem:[%s1476_s9 + $0x88] sm:$0xff]  ;;  %v999_v27 = vld [vmem:[%s1476_s9 + $0x80] sm:$0xff] }
   0xd   :  { %v1004_v28 = vld [vmem:[%s1476_s9 + $0xa8] sm:$0xff]  ;;  %v1005_v29 = vld [vmem:[%s1476_s9 + $0xb0] sm:$0xff]  ;;  %v50_v30 = vld [vmem:[%s1472_s5 + $0x38] sm:$0xff] }
   0xe   :  { %150 = vperm.xlu2 %1037, %v50_v30   ;;  %v49_v31 = vld [vmem:[%s1472_s5 + $0x30] sm:$0xff]  ;;  %v52_v32 = vld [vmem:[%s1472_s5 + $0x48] sm:$0xff]  ;;  %v320_v34 = vld [vmem:[%s1476_s9 + $0x38] sm:$0xff] }
   0xf   :  { %v315_v33 = vld [vmem:[%s1476_s9 + $0x10] sm:$0xff]  ;;  %v317_v36 = vld [vmem:[%s1476_s9 + $0x20] sm:$0xff]  ;;  %v54_v39 = vld [vmem:[%s1472_s5 + $0x58] sm:$0xff] }
  0x10   :  { %v323_v42 = vld [vmem:[%s1476_s9 + $0x50] sm:$0xff]  ;;  %v996_v52 = vld [vmem:[%s1476_s9 + $0x68] sm:$0xff]  ;;  %v129_v55 = vld [vmem:[%s1469_s2] sm:$0xff] }
  0x11   :  { %v1001_v56 = vld [vmem:[%s1476_s9 + $0x90] sm:$0xff]  ;;  %v130_v57 = vld [vmem:[%s1469_s2 + $0x8] sm:$0xff]  ;;  %v1003_v58 = vld [vmem:[%s1476_s9 + $0xa0] sm:$0xff] }
  0x12   :  { %140 = vperm.xlu0 %1035, %v48_v8   ;;  %v131_v59 = vld [vmem:[%s1469_s2 + $0x10] sm:$0xff]  ;;  %v1006_v60 = vld [vmem:[%s1476_s9 + $0xb8] sm:$0xff]  ;;  %v199_v63 = vld [vmem:[%s1471_s4] sm:$0xff]  ;;  %s1090_s9 = smov 128  }
  0x13   :  { %135 = vperm.xlu1 %1036, %v47_v9   ;;  %960 = vmatmul.msk.f32.gmra.mxu0 %vm79_vm1, %v57_v10  ;;  %v132_v61 = vld [vmem:[%s1469_s2 + $0x18] sm:$0xff]  ;;  %v200_v1 = vld [vmem:[%s1471_s4 + $0x8] sm:$0xff]  ;;  %v201_v4 = vld [vmem:[%s1471_s4 + $0x10] sm:$0xff]  ;;  %s945_s2 = sshll.u32 %s1479_s12, 4  ;;  %s946_s2 = int_to_ptr.hbm [resolvable:$true] %s945_s2 }
  0x14   :  { %971 = vmatmul.msk.f32.vlgmr.msra.gmra.mxu3 %vm79_vm1, %v199_v63 }
  0x16   :  { %145 = vperm.xlu2 %1037, %v49_v31  }
  0x1a   :  { %291 = vperm.xlu0 %1035, %v51_v11  }
  0x1b   :  { %346 = vperm.xlu1 %1036, %v316_v12   ;;  %961 = vmatmul.msk.f32.gmra.mxu0 %vm79_vm1, %v58_v13  ;;  %v202_v12 = vld [vmem:[%s1471_s4 + $0x18] sm:$0xff] }
  0x1c   :  { %972 = vmatmul.msk.f32.gmra.mxu3 %vm79_vm1, %v200_v1 }
  0x1e   :  { %296 = vperm.xlu2 %1037, %v52_v32   ;;  %v325_v32 = vld [vmem:[%s1473_s6] sm:$0xff] }
  0x22   :  { %336 = vperm.xlu0 %1035, %v314_v14  }
  0x23   :  { %331 = vperm.xlu1 %1036, %v313_v15  }
  0x24   :  { %973 = vmatmul.msk.f32.gmra.mxu3 %vm79_vm1, %v201_v4 }
  0x26   :  { %341 = vperm.xlu2 %1037, %v315_v33   ;;  %v326_v33 = vld [vmem:[%s1473_s6 + $0x8] sm:$0xff] }
  0x2a   :  { %411 = vperm.xlu0 %1035, %v319_v16  }
  0x2b   :  { %406 = vperm.xlu1 %1036, %v318_v17  }
  0x2c   :  { %974 = vmatmul.msk.f32.gmra.mxu3 %vm79_vm1, %v202_v12  ;;  %v466_v12 = vld [vmem:[%s1475_s8 + $0x10] sm:$0xff] }
  0x2e   :  { %416 = vperm.xlu2 %1037, %v320_v34   ;;  %v327_v34 = vld [vmem:[%s1473_s6 + $0x10] sm:$0xff] }
  0x32   :  { %475 = vperm.xlu0 %1035, %v322_v18   ;;  %v203_v18 = vld [vmem:[%s1470_s3] sm:$0xff] }
  0x33   :  { %470 = vperm.xlu1 %1036, %v321_v19   ;;  %v204_v19 = vld [vmem:[%s1470_s3 + $0x8] sm:$0xff] }
  0x36   :  { %401 = vperm.xlu2 %1037, %v317_v36  }
  0x3a   :  { %301 = vperm.xlu0 %1035, %v53_v20   ;;  %v205_v20 = vld [vmem:[%s1470_s3 + $0x10] sm:$0xff] }
  0x3b   :  { %485 = vperm.xlu1 %1036, %v324_v21   ;;  %v206_v21 = vld [vmem:[%s1470_s3 + $0x18] sm:$0xff] }
  0x3e   :  { %306 = vperm.xlu2 %1037, %v54_v39  }
  0x42   :  { %662 = vperm.xlu0 %1035, %v998_v22  }
  0x43   :  { %657 = vperm.xlu1 %1036, %v997_v23  }
  0x46   :  { %480 = vperm.xlu2 %1037, %v323_v42  }
  0x4a   :  { %647 = vperm.xlu0 %1035, %v995_v24  }
  0x4b   :  { %732 = vperm.xlu1 %1036, %v1002_v25  }
  0x4e   :  { %652 = vperm.xlu2 %1037, %v996_v52   ;;  %v395_v52 = vld [vmem:[%s1474_s7] sm:$0xff] }
  0x52   :  { %722 = vperm.xlu0 %1035, %v1000_v26  }
  0x53   :  { %717 = vperm.xlu1 %1036, %v999_v27  }
  0x56   :  { %727 = vperm.xlu2 %1037, %v1001_v56  }
  0x5a   :  { %792 = vperm.xlu0 %1035, %v1004_v28  }
  0x5b   :  { %797 = vperm.xlu1 %1036, %v1005_v29  }
  0x5e   :  { %787 = vperm.xlu2 %1037, %v1003_v58  }
  0x66   :  { %802 = vperm.xlu2 %1037, %v1006_v60  }
  0x68   :  { %v151_v2 = vpop.permute.xlu2 %150 }
  0x70   :  { %v146_v5 = vpop.permute.xlu2 %145 }
  0x74   :  { %v77_v38 = vpop.permute.xlu0 %76 }
  0x75   :  { %v67_v41 = vpop.permute.xlu1 %66 }
  0x78   :  { %v297_v28 = vpop.permute.xlu2 %296 }
  0x7c   :  { %v72_v43 = vpop.permute.xlu0 %71 }
  0x7d   :  { %v62_v49 = vpop.permute.xlu1 %61 }
  0x80   :  { %v113_v35 = vpop.f32.mrf.mxu0 }
  0x81   :  { %v114_v50 = vadd.f32 %v113_v35, %v62_v49  ;;  %v328_v35 = vld [vmem:[%s1473_s6 + $0x18] sm:$0xff] }
  0x83   :  { %v125_v54 = vmax.f32 %v114_v50, 0.0 }
  0x84   :  { %v141_v9 = vpop.permute.xlu0 %140 }
  0x85   :  { %v136_v13 = vpop.permute.xlu1 %135 }
  0x88   :  { %v116_v37 = vpop.f32.mrf.mxu0 }
  0x89   :  { %v117_v47 = vadd.f32 %v116_v37, %v67_v41 }
  0x8b   :  { %v126_v53 = vmax.f32 %v117_v47, 0.0 }
  0x8c   :  { %v292_v30 = vpop.permute.xlu0 %291 }
  0x8d   :  { %v347_v39 = vpop.permute.xlu1 %346 }
  0x90   :  { %v119_v40 = vpop.f32.mrf.mxu0 }
  0x91   :  { %v120_v45 = vadd.f32 %v119_v40, %v72_v43  ;;  %v342_v40 = vpop.permute.xlu2 %341 }
  0x93   :  { %v127_v51 = vmax.f32 %v120_v45, 0.0 }
  0x95   :  { %v332_v47 = vpop.permute.xlu1 %331 }
  0x97   :  { %v277_v22 = vpop.f32.mrf.mxu3 }
  0x98   :  { %v122_v44 = vpop.f32.mrf.mxu0 }
  0x99   :  { %v123_v46 = vadd.f32 %v122_v44, %v77_v38  ;;  %v337_v44 = vpop.permute.xlu0 %336 }
  0x9b   :  { %v128_v48 = vmax.f32 %v123_v46, 0.0 }
  0x9d   :  { %178 = vmatpush.msra.mxu1 %v128_v48 }
  0x9f   :  { %179 = vmatpush.msra.mxu1 %v127_v51  ;;  %v280_v24 = vpop.f32.mrf.mxu3 }
  0xa1   :  { %180 = vmatpush.msra.mxu1 %v126_v53  ;;  %v396_v53 = vld [vmem:[%s1474_s7 + $0x8] sm:$0xff] }
  0xa3   :  { %181 = vmatpush.msra.mxu1 %v125_v54  ;;  %v397_v54 = vld [vmem:[%s1474_s7 + $0x10] sm:$0xff] }
  0xa4   :  { %962 = vmatmul.msk.f32.vlgmr.msra.gmra.mxu1 %vm153_vm2, %v129_v55  ;;  %v398_v55 = vld [vmem:[%s1474_s7 + $0x18] sm:$0xff] }
  0xa7   :  { %v283_v56 = vpop.f32.mrf.mxu3 }
  0xac   :  { %963 = vmatmul.msk.f32.gmra.mxu1 %vm153_vm2, %v130_v57 }
  0xaf   :  { %v286_v57 = vpop.f32.mrf.mxu3 }
  0xb4   :  { %964 = vmatmul.msk.f32.gmra.mxu1 %vm153_vm2, %v131_v59 }
  0xbc   :  { %965 = vmatmul.msk.f32.gmra.mxu1 %vm153_vm2, %v132_v61  ;;  %v417_v61 = vpop.permute.xlu2 %416 }
 0x121   :  { %v183_v62 = vpop.f32.mrf.mxu1 }
 0x122   :  { %v184_v14 = vadd.f32 %v183_v62, %v136_v13  ;;  %v412_v62 = vpop.permute.xlu0 %411  ;;  %v467_v13 = vld [vmem:[%s1475_s8 + $0x18] sm:$0xff] }
 0x124   :  { %v195_v17 = vmax.f32 %v184_v14, 0.0  ;;  %v541_v14 = vld [vmem:[%s1478_s11] sm:$0xff] }
 0x129   :  { %v186_v0 = vpop.f32.mrf.mxu1 }
 0x12a   :  { %v187_v10 = vadd.f32 %v186_v0, %v141_v9 }
 0x12c   :  { %v196_v16 = vmax.f32 %v187_v10, 0.0  ;;  %v464_v10 = vld [vmem:[%s1475_s8] sm:$0xff] }
 0x131   :  { %v189_v3 = vpop.f32.mrf.mxu1 }
 0x132   :  { %v190_v7 = vadd.f32 %v189_v3, %v146_v5  ;;  %v402_v5 = vpop.permute.xlu2 %401 }
 0x134   :  { %v197_v15 = vmax.f32 %v190_v7, 0.0 }
 0x139   :  { %v192_v6 = vpop.f32.mrf.mxu1 }
 0x13a   :  { %v193_v8 = vadd.f32 %v192_v6, %v151_v2  ;;  %v407_v2 = vpop.permute.xlu1 %406 }
 0x13c   :  { %v198_v11 = vmax.f32 %v193_v8, 0.0 }
 0x13e   :  { %231 = vmatpush.msra.mxu2 %v198_v11  ;;  %v465_v11 = vld [vmem:[%s1475_s8 + $0x8] sm:$0xff] }
 0x140   :  { %232 = vmatpush.msra.mxu2 %v197_v15 }
 0x142   :  { %233 = vmatpush.msra.mxu2 %v196_v16  ;;  %v542_v16 = vld [vmem:[%s1478_s11 + $0x8] sm:$0xff] }
 0x144   :  { %234 = vmatpush.msra.mxu2 %v195_v17 }
 0x145   :  { %966 = vmatmul.msk.f32.vlgmr.msra.gmra.mxu2 %vm153_vm2, %v203_v18  ;;  %v476_v18 = vpop.permute.xlu0 %475 }
 0x14d   :  { %967 = vmatmul.msk.f32.gmra.mxu2 %vm153_vm2, %v204_v19 }
 0x155   :  { %968 = vmatmul.msk.f32.gmra.mxu2 %vm153_vm2, %v205_v20  ;;  %v471_v20 = vpop.permute.xlu1 %470 }
 0x15d   :  { %969 = vmatmul.msk.f32.gmra.mxu2 %vm153_vm2, %v206_v21 }
 0x1c8   :  { %v236_v23 = vpop.f32.mrf.mxu2 }
 0x1c9   :  { %v278_v26 = vadd.f32 %v277_v22, %v236_v23 }
 0x1cb   :  { %v309_v31 = vadd.f32 %v292_v30, %v278_v26 }
 0x1d0   :  { %v239_v25 = vpop.f32.mrf.mxu2 }
 0x1d1   :  { %v281_v27 = vadd.f32 %v280_v24, %v239_v25  ;;  %v307_v24 = vpop.permute.xlu2 %306 }
 0x1d3   :  { %v310_v29 = vadd.f32 %v297_v28, %v281_v27 }
 0x1d5   :  { %376 = vmatpush.msrb.mxu0 %v310_v29  ;;  %571 = vmatpush.msrb.mxu2 %v310_v29 }
 0x1d7   :  { %377 = vmatpush.msrb.mxu0 %v309_v31  ;;  %572 = vmatpush.msrb.mxu2 %v309_v31  ;;  %v302_v31 = vpop.permute.xlu0 %301 }
 0x1d8   :  { %975 = vmatmul.msk.f32.vlgmr.msrb.gmra.mxu0 %vm349_vm3, %v325_v32  ;;  %987 = vmatmul.msk.f32.vlgmr.msrb.gmra.mxu2 %vm349_vm3, %v541_v14  ;;  %v242_v17 = vpop.f32.mrf.mxu2  ;;  %v486_v32 = vpop.permute.xlu1 %485 }
 0x1d9   :  { %v284_v29 = vadd.f32 %v283_v56, %v242_v17  ;;  %v1007_v56 = vld [vmem:[%s1473_s6 + $0x20] sm:$0xff] }
 0x1e0   :  { %976 = vmatmul.msk.f32.gmra.mxu0 %vm349_vm3, %v326_v33  ;;  %988 = vmatmul.msk.f32.gmra.mxu2 %vm349_vm3, %v542_v16  ;;  %v245_v26 = vpop.f32.mrf.mxu2 }
 0x1e1   :  { %v287_v28 = vadd.f32 %v286_v57, %v245_v26 }
 0x1e3   :  { %v312_v33 = vadd.f32 %v307_v24, %v287_v28 }
 0x1e8   :  { %977 = vmatmul.msk.f32.gmra.mxu0 %vm349_vm3, %v327_v34 }
 0x1f0   :  { %978 = vmatmul.msk.f32.gmra.mxu0 %vm349_vm3, %v328_v35  ;;  %v481_v35 = vpop.permute.xlu2 %480 }
 0x255   :  { %v379_v36 = vpop.f32.mrf.mxu0 }
 0x256   :  { %v380_v48 = vadd.f32 %v379_v36, %v332_v47 }
 0x258   :  { %v391_v51 = vmax.f32 %v380_v48, 0.0 }
 0x25d   :  { %v382_v37 = vpop.f32.mrf.mxu0 }
 0x25e   :  { %v383_v45 = vadd.f32 %v382_v37, %v337_v44  ;;  %v311_v37 = vadd.f32 %v302_v31, %v284_v29  ;;  %v537_v44 = vld [vmem:[%s1477_s10] sm:$0xff]  ;;  %v663_v29 = vpop.permute.xlu0 %662 }
 0x260   :  { %v392_v50 = vmax.f32 %v383_v45, 0.0  ;;  %v538_v45 = vld [vmem:[%s1477_s10 + $0x8] sm:$0xff] }
 0x265   :  { %v385_v38 = vpop.f32.mrf.mxu0 }
 0x266   :  { %v386_v42 = vadd.f32 %v385_v38, %v342_v40 }
 0x268   :  { %v393_v49 = vmax.f32 %v386_v42, 0.0 }
 0x26d   :  { %v388_v41 = vpop.f32.mrf.mxu0 }
 0x26e   :  { %v389_v43 = vadd.f32 %v388_v41, %v347_v39 }
 0x270   :  { %v394_v46 = vmax.f32 %v389_v43, 0.0 }
 0x272   :  { %443 = vmatpush.msrb.mxu3 %v394_v46  ;;  %v574_v46 = vpop.f32.mrf.mxu2 }
 0x274   :  { %444 = vmatpush.msrb.mxu3 %v393_v49 }
 0x276   :  { %445 = vmatpush.msrb.mxu3 %v392_v50 }
 0x278   :  { %446 = vmatpush.msrb.mxu3 %v391_v51 }
 0x279   :  { %979 = vmatmul.msk.f32.vlgmr.msrb.gmra.mxu3 %vm153_vm2, %v395_v52 }
 0x27a   :  { %v577_v51 = vpop.f32.mrf.mxu2 }
 0x281   :  { %980 = vmatmul.msk.f32.gmra.mxu3 %vm153_vm2, %v396_v53 }
 0x289   :  { %981 = vmatmul.msk.f32.gmra.mxu3 %vm153_vm2, %v397_v54 }
 0x291   :  { %982 = vmatmul.msk.f32.gmra.mxu3 %vm153_vm2, %v398_v55 }
 0x2fc   :  { %v448_v58 = vpop.f32.mrf.mxu3 }
 0x2fd   :  { %v449_v6 = vadd.f32 %v448_v58, %v402_v5 }
 0x2ff   :  { %v460_v9 = vmax.f32 %v449_v6, 0.0 }
 0x304   :  { %v451_v59 = vpop.f32.mrf.mxu3 }
 0x305   :  { %v452_v3 = vadd.f32 %v451_v59, %v407_v2 }
 0x307   :  { %v461_v8 = vmax.f32 %v452_v3, 0.0 }
 0x30c   :  { %v454_v60 = vpop.f32.mrf.mxu3 }
 0x30d   :  { %v455_v0 = vadd.f32 %v454_v60, %v412_v62  ;;  %v1008_v62 = vld [vmem:[%s1473_s6 + $0x28] sm:$0xff] }
 0x30f   :  { %v462_v7 = vmax.f32 %v455_v0, 0.0 }
 0x314   :  { %v457_v63 = vpop.f32.mrf.mxu3 }
 0x315   :  { %v458_v1 = vadd.f32 %v457_v63, %v417_v61 }
 0x317   :  { %v463_v4 = vmax.f32 %v458_v1, 0.0 }
 0x319   :  { %512 = vmatpush.msrb.mxu1 %v463_v4 }
 0x31b   :  { %513 = vmatpush.msrb.mxu1 %v462_v7 }
 0x31d   :  { %514 = vmatpush.msrb.mxu1 %v461_v8 }
 0x31f   :  { %515 = vmatpush.msrb.mxu1 %v460_v9  ;;  %v1009_v9 = vld [vmem:[%s1473_s6 + $0x30] sm:$0xff] }
 0x320   :  { %983 = vmatmul.msk.f32.vlgmr.msrb.gmra.mxu1 %vm153_vm2, %v464_v10 }
 0x328   :  { %984 = vmatmul.msk.f32.gmra.mxu1 %vm153_vm2, %v465_v11 }
 0x330   :  { %985 = vmatmul.msk.f32.gmra.mxu1 %vm153_vm2, %v466_v12 }
 0x338   :  { %986 = vmatmul.msk.f32.gmra.mxu1 %vm153_vm2, %v467_v13 }
 0x39d   :  { %v517_v15 = vpop.f32.mrf.mxu1 }
 0x39e   :  { %v518_v22 = vadd.f32 %v517_v15, %v471_v20 }
 0x3a0   :  { %v529_v25 = vmul.f32 1.442695, %v518_v22 }
 0x3a5   :  { %v520_v19 = vpop.f32.mrf.mxu1 }
 0x3a6   :  { %v521_v21 = vadd.f32 %v520_v19, %v476_v18 }
 0x3a8   :  { %v531_v23 = vmul.f32 1.442695, %v521_v21  ;;  %v1010_v21 = vld [vmem:[%s1473_s6 + $0x38] sm:$0xff]  ;;  %s1091_s6 = smov 8  }
 0x3aa   :  { %1038 = vpow2.f32 %v531_v23 }
 0x3ab   :  { %1040 = vpow2.f32 %v529_v25 }
 0x3ad   :  { %v523_v27 = vpop.f32.mrf.mxu1 }
 0x3ae   :  { %v524_v38 = vadd.f32 %v523_v27, %v481_v35 }
 0x3b0   :  { %v1039_v30 = vpop.eup %1038 }
 0x3b1   :  { %v1041_v34 = vpop.eup %1040  ;;  %v534_v40 = vmul.f32 %v1039_v30, %v312_v33  ;;  %v658_v30 = vpop.permute.xlu1 %657 }
 0x3b2   :  { %v533_v41 = vmul.f32 %v1041_v34, %v311_v37  ;;  %v653_v34 = vpop.permute.xlu2 %652  ;;  %v648_v37 = vpop.permute.xlu0 %647 }
 0x3b4   :  { %v535_v43 = vadd.f32 %v533_v41, %v524_v38 }
 0x3b5   :  { %v526_v36 = vpop.f32.mrf.mxu1 }
 0x3b6   :  { %v527_v39 = vadd.f32 %v526_v36, %v486_v32 }
 0x3b8   :  { %v536_v42 = vadd.f32 %v534_v40, %v527_v39 }
 0x3ba   :  { %612 = vmatpush.msra.mxu0 %v536_v42  ;;  %v1015_v42 = vld [vmem:[%s1474_s7 + $0x20] sm:$0xff] }
 0x3bc   :  { %613 = vmatpush.msra.mxu0 %v535_v43  ;;  %v1016_v43 = vld [vmem:[%s1474_s7 + $0x28] sm:$0xff] }
 0x3bd   :  { %991 = vmatmul.msk.f32.vlgmr.msra.gmra.mxu0 %vm349_vm3, %v537_v44  ;;  %v1017_v44 = vld [vmem:[%s1474_s7 + $0x30] sm:$0xff] }
 0x3c5   :  { %992 = vmatmul.msk.f32.gmra.mxu0 %vm349_vm3, %v538_v45  ;;  %v1018_v45 = vld [vmem:[%s1474_s7 + $0x38] sm:$0xff] }
 0x43a   :  { %v615_v47 = vpop.f32.mrf.mxu0 }
 0x43b   :  { %v616_v48 = vadd.f32 %v615_v47, %v574_v46  ;;  %v543_v46 = vld [vmem:[%s1478_s11 + $0x10] sm:$0xff] }
 0x43c   :  { %989 = vmatmul.msk.f32.gmra.mxu2 %vm349_vm3, %v543_v46  ;;  %v539_v47 = vld [vmem:[%s1477_s10 + $0x10] sm:$0xff] }
 0x43d   :  { %v903_v49 = vand.u32 2147483647, %v616_v48  ;;  %v897_v7 = vmax.f32 %v616_v48, 0.0  ;;  %vm899_vm5 = vcmp.ne.f32.partialorder %v616_v48, %v616_v48  ;;  %993 = vmatmul.msk.f32.gmra.mxu0 %vm349_vm3, %v539_v47 }
 0x43f   :  { %v905_v50 = vsub.f32 0.0, %v903_v49 }
 0x441   :  { %v907_v52 = vmul.f32 1.442695, %v905_v50  ;;  %v540_v50 = vld [vmem:[%s1477_s10 + $0x18] sm:$0xff] }
 0x442   :  { %v618_v53 = vpop.f32.mrf.mxu0 }
 0x443   :  { %1042 = vpow2.f32 %v907_v52  ;;  %v619_v54 = vadd.f32 %v618_v53, %v577_v51  ;;  %v733_v53 = vpop.permute.xlu1 %732 }
 0x445   :  { %v904_v55 = vand.u32 2147483647, %v619_v54  ;;  %691 = vmatpush.msra.mxu3 %v619_v54  ;;  %v898_v19 = vmax.f32 %v619_v54, 0.0  ;;  %vm900_vm8 = vcmp.ne.f32.partialorder %v619_v54, %v619_v54  ;;  %994 = vmatmul.msk.f32.gmra.mxu0 %vm349_vm3, %v540_v50 }
 0x447   :  { %v906_v57 = vsub.f32 0.0, %v904_v55  ;;  %692 = vmatpush.msra.mxu3 %v616_v48 }
 0x448   :  { %1011 = vmatmul.msk.f32.vlgmr.msra.gmra.mxu3 %vm349_vm3, %v1007_v56 }
 0x449   :  { %v1043_v58 = vpop.eup %1042  ;;  %v909_v59 = vmul.f32 1.442695, %v906_v57 }
 0x44a   :  { %v911_v60 = vadd.f32 1.0, %v1043_v58  ;;  %v914_v61 = vmul.f32 -0.5, %v1043_v58  ;;  %v917_v0 = vand.u32 2147483647, %v1043_v58 }
 0x44b   :  { %1044 = vpow2.f32 %v909_v59 }
 0x44c   :  { %1046 = vlog2.f32 %v911_v60  ;;  %v915_v63 = vadd.f32 1.0, %v914_v61  ;;  %vm918_vm4 = vcmp.lt.f32.partialorder %v917_v0, 0.0004427343  ;;  %v718_v61 = vpop.permute.xlu1 %717 }
 0x44e   :  { %v916_v5 = vmul.f32 %v1043_v58, %v915_v63  ;;  %v723_v58 = vpop.permute.xlu0 %722 }
 0x450   :  { %1012 = vmatmul.msk.f32.gmra.mxu3 %vm349_vm3, %v1008_v62 }
 0x451   :  { %v1045_v1 = vpop.eup %1044 }
 0x452   :  { %v1047_v2 = vpop.eup %1046  ;;  %v920_v3 = vadd.f32 1.0, %v1045_v1  ;;  %v923_v6 = vmul.f32 -0.5, %v1045_v1  ;;  %v926_v13 = vand.u32 2147483647, %v1045_v1 }
 0x453   :  { %v913_v4 = vmul.f32 0.6931472, %v1047_v2  ;;  %v1023_v2 = vld [vmem:[%s1475_s8 + $0x20] sm:$0xff] }
 0x454   :  { %1048 = vlog2.f32 %v920_v3  ;;  %v924_v11 = vadd.f32 1.0, %v923_v6  ;;  %vm927_vm7 = vcmp.lt.f32.partialorder %v926_v13, 0.0004427343  ;;  %v1024_v3 = vld [vmem:[%s1475_s8 + $0x28] sm:$0xff] }
 0x455   :  { %v919_v8 = vsel %vm918_vm4, %v916_v5, %v913_v4  ;;  %v1025_v4 = vld [vmem:[%s1475_s8 + $0x30] sm:$0xff]  ;;  %v1026_v5 = vld [vmem:[%s1475_s8 + $0x38] sm:$0xff]  ;;  %s1089_s8 = smov [#allocation2]  }
 0x456   :  { %v929_v10 = vadd.f32 %v919_v8, %v897_v7  ;;  %v925_v18 = vmul.f32 %v1045_v1, %v924_v11  ;;  %s943_s13 = sshll.u32 %s1089_s8, 4  ;;  %s944_s13 = int_to_ptr.vmem [resolvable:$true] %s943_s13 }
 0x458   :  { %v931_v12 = vsel %vm899_vm5, %v616_v48, %v929_v10  ;;  %1013 = vmatmul.msk.f32.gmra.mxu3 %vm349_vm3, %v1009_v9  ;;  %v544_v48 = vld [vmem:[%s1478_s11 + $0x18] sm:$0xff] }
 0x459   :  { %v933_v14 = vmax.f32 %v931_v12, 1e-07  ;;  %990 = vmatmul.msk.f32.gmra.mxu2 %vm349_vm3, %v544_v48  ;;  %v793_v12 = vpop.permute.xlu0 %792 }
 0x45a   :  { %v1049_v15 = vpop.eup %1048 }
 0x45b   :  { %v935_v16 = vmin.f32 %v933_v14, 10000000.0  ;;  %v922_v17 = vmul.f32 0.6931472, %v1049_v15 }
 0x45d   :  { %937 = vst.msk [vmem:[#allocation2 + $0x10] sm:$0xff] %vm894_vm6, %v935_v16  ;;  %v928_v20 = vsel %vm927_vm7, %v925_v18, %v922_v17 }
 0x45e   :  { %v930_v22 = vadd.f32 %v928_v20, %v898_v19  ;;  %v798_v19 = vpop.permute.xlu1 %797 }
 0x460   :  { %v932_v23 = vsel %vm900_vm8, %v619_v54, %v930_v22  ;;  %1014 = vmatmul.msk.f32.gmra.mxu3 %vm349_vm3, %v1010_v21  ;;  %v728_v54 = vpop.permute.xlu2 %727 }
 0x461   :  { %v934_v24 = vmax.f32 %v932_v23, 1e-07 }
 0x463   :  { %v936_v25 = vmin.f32 %v934_v24, 10000000.0 }
 0x465   :  { %938 = vst.msk [vmem:[#allocation2 + $0x18] sm:$0xff] %vm894_vm6, %v936_v25 }
 0x468   :  { %v788_v8 = vpop.permute.xlu2 %787 }
 0x4ba   :  { %v621_v15 = vpop.f32.mrf.mxu0 }
 0x4bf   :  { %v580_v6 = vpop.f32.mrf.mxu2 }
 0x4c0   :  { %v622_v18 = vadd.f32 %v621_v15, %v580_v6 }
 0x4c2   :  { %v624_v24 = vpop.f32.mrf.mxu0 }
 0x4cb   :  { %v694_v26 = vpop.f32.mrf.mxu3 }
 0x4cc   :  { %v695_v38 = vadd.f32 %v694_v26, %v648_v37 }
 0x4ce   :  { %v706_v41 = vmax.f32 %v695_v38, 0.0 }
 0x4d3   :  { %v697_v27 = vpop.f32.mrf.mxu3 }
 0x4d4   :  { %v698_v35 = vadd.f32 %v697_v27, %v653_v34 }
 0x4d6   :  { %v707_v40 = vmax.f32 %v698_v35, 0.0 }
 0x4db   :  { %v700_v28 = vpop.f32.mrf.mxu3 }
 0x4dc   :  { %v701_v32 = vadd.f32 %v700_v28, %v658_v30  ;;  %v583_v7 = vpop.f32.mrf.mxu2 }
 0x4dd   :  { %v625_v28 = vadd.f32 %v624_v24, %v583_v7 }
 0x4de   :  { %v708_v39 = vmax.f32 %v701_v32, 0.0 }
 0x4e3   :  { %v703_v31 = vpop.f32.mrf.mxu3 }
 0x4e4   :  { %v704_v33 = vadd.f32 %v703_v31, %v663_v29  ;;  %v803_v29 = vpop.permute.xlu2 %802 }
 0x4e6   :  { %v709_v36 = vmax.f32 %v704_v33, 0.0 }
 0x4e8   :  { %759 = vmatpush.msra.mxu1 %v709_v36 }
 0x4ea   :  { %760 = vmatpush.msra.mxu1 %v708_v39 }
 0x4ec   :  { %761 = vmatpush.msra.mxu1 %v707_v40 }
 0x4ee   :  { %762 = vmatpush.msra.mxu1 %v706_v41 }
 0x4ef   :  { %1019 = vmatmul.msk.f32.vlgmr.msra.gmra.mxu1 %vm153_vm2, %v1015_v42 }
 0x4f7   :  { %1020 = vmatmul.msk.f32.gmra.mxu1 %vm153_vm2, %v1016_v43 }
 0x4ff   :  { %1021 = vmatmul.msk.f32.gmra.mxu1 %vm153_vm2, %v1017_v44 }
 0x507   :  { %1022 = vmatmul.msk.f32.gmra.mxu1 %vm153_vm2, %v1018_v45 }
 0x56c   :  { %v764_v49 = vpop.f32.mrf.mxu1 }
 0x56d   :  { %v765_v62 = vadd.f32 %v764_v49, %v718_v61 }
 0x56f   :  { %v776_v1 = vmax.f32 %v765_v62, 0.0 }
 0x574   :  { %v767_v51 = vpop.f32.mrf.mxu1 }
 0x575   :  { %v768_v59 = vadd.f32 %v767_v51, %v723_v58 }
 0x577   :  { %v777_v0 = vmax.f32 %v768_v59, 0.0 }
 0x57c   :  { %v770_v52 = vpop.f32.mrf.mxu1 }
 0x57d   :  { %v771_v56 = vadd.f32 %v770_v52, %v728_v54 }
 0x57f   :  { %v778_v63 = vmax.f32 %v771_v56, 0.0 }
 0x584   :  { %v773_v55 = vpop.f32.mrf.mxu1 }
 0x585   :  { %v774_v57 = vadd.f32 %v773_v55, %v733_v53 }
 0x587   :  { %v779_v60 = vmax.f32 %v774_v57, 0.0 }
 0x589   :  { %829 = vmatpush.msra.mxu2 %v779_v60 }
 0x58b   :  { %830 = vmatpush.msra.mxu2 %v778_v63 }
 0x58d   :  { %831 = vmatpush.msra.mxu2 %v777_v0 }
 0x58f   :  { %832 = vmatpush.msra.mxu2 %v776_v1 }
 0x590   :  { %1027 = vmatmul.msk.f32.vlgmr.msra.gmra.mxu2 %vm153_vm2, %v1023_v2 }
 0x598   :  { %1028 = vmatmul.msk.f32.gmra.mxu2 %vm153_vm2, %v1024_v3 }
 0x5a0   :  { %1029 = vmatmul.msk.f32.gmra.mxu2 %vm153_vm2, %v1025_v4 }
 0x5a8   :  { %1030 = vmatmul.msk.f32.gmra.mxu2 %vm153_vm2, %v1026_v5 }
 0x613   :  { %v834_v9 = vpop.f32.mrf.mxu2 }
 0x614   :  { %v835_v10 = vadd.f32 %v834_v9, %v788_v8 }
 0x616   :  { %v846_v11 = vmul.f32 1.442695, %v835_v10 }
 0x618   :  { %1050 = vpow2.f32 %v846_v11 }
 0x61b   :  { %v837_v13 = vpop.f32.mrf.mxu2 }
 0x61c   :  { %v838_v14 = vadd.f32 %v837_v13, %v793_v12 }
 0x61e   :  { %v848_v16 = vmul.f32 1.442695, %v838_v14  ;;  %v1051_v17 = vpop.eup %1050 }
 0x61f   :  { %v850_v21 = vmul.f32 %v1051_v17, %v622_v18 }
 0x620   :  { %1052 = vpow2.f32 %v848_v16 }
 0x623   :  { %v840_v20 = vpop.f32.mrf.mxu2 }
 0x624   :  { %v841_v22 = vadd.f32 %v840_v20, %v798_v19 }
 0x626   :  { %v852_v23 = vadd.f32 %v850_v21, %v841_v22  ;;  %v1053_v26 = vpop.eup %1052 }
 0x627   :  { %v851_v32 = vmul.f32 %v1053_v26, %v625_v28 }
 0x628   :  { %v860_v25 = vand.u32 2147483647, %v852_v23  ;;  %v854_v49 = vmax.f32 %v852_v23, 0.0  ;;  %vm856_vm10 = vcmp.ne.f32.partialorder %v852_v23, %v852_v23 }
 0x62a   :  { %v862_v27 = vsub.f32 0.0, %v860_v25 }
 0x62b   :  { %v843_v30 = vpop.f32.mrf.mxu2 }
 0x62c   :  { %v864_v31 = vmul.f32 1.442695, %v862_v27  ;;  %v844_v33 = vadd.f32 %v843_v30, %v803_v29 }
 0x62e   :  { %1054 = vpow2.f32 %v864_v31  ;;  %v853_v34 = vadd.f32 %v851_v32, %v844_v33 }
 0x630   :  { %v861_v35 = vand.u32 2147483647, %v853_v34  ;;  %v855_v60 = vmax.f32 %v853_v34, 0.0  ;;  %vm857_vm12 = vcmp.ne.f32.partialorder %v853_v34, %v853_v34 }
 0x632   :  { %v863_v36 = vsub.f32 0.0, %v861_v35 }
 0x634   :  { %v1055_v37 = vpop.eup %1054  ;;  %v866_v38 = vmul.f32 1.442695, %v863_v36 }
 0x635   :  { %v868_v39 = vadd.f32 1.0, %v1055_v37  ;;  %v871_v40 = vmul.f32 -0.5, %v1055_v37  ;;  %v874_v42 = vand.u32 2147483647, %v1055_v37 }
 0x636   :  { %1056 = vpow2.f32 %v866_v38 }
 0x637   :  { %1058 = vlog2.f32 %v868_v39  ;;  %v872_v41 = vadd.f32 1.0, %v871_v40  ;;  %vm875_vm9 = vcmp.lt.f32.partialorder %v874_v42, 0.0004427343 }
 0x639   :  { %v873_v47 = vmul.f32 %v1055_v37, %v872_v41 }
 0x63c   :  { %v1057_v43 = vpop.eup %1056 }
 0x63d   :  { %v1059_v44 = vpop.eup %1058  ;;  %v877_v45 = vadd.f32 1.0, %v1057_v43  ;;  %v880_v48 = vmul.f32 -0.5, %v1057_v43  ;;  %v883_v54 = vand.u32 2147483647, %v1057_v43 }
 0x63e   :  { %v870_v46 = vmul.f32 0.6931472, %v1059_v44 }
 0x63f   :  { %1060 = vlog2.f32 %v877_v45  ;;  %v881_v52 = vadd.f32 1.0, %v880_v48  ;;  %vm884_vm11 = vcmp.lt.f32.partialorder %v883_v54, 0.0004427343 }
 0x640   :  { %v876_v50 = vsel %vm875_vm9, %v873_v47, %v870_v46 }
 0x641   :  { %v886_v51 = vadd.f32 %v876_v50, %v854_v49  ;;  %v882_v59 = vmul.f32 %v1057_v43, %v881_v52 }
 0x643   :  { %v888_v53 = vsel %vm856_vm10, %v852_v23, %v886_v51 }
 0x644   :  { %v890_v55 = vmax.f32 %v888_v53, 1e-07 }
 0x645   :  { %v1061_v56 = vpop.eup %1060 }
 0x646   :  { %v892_v57 = vmin.f32 %v890_v55, 10000000.0  ;;  %v879_v58 = vmul.f32 0.6931472, %v1061_v56 }
 0x648   :  { %895 = vst.msk [vmem:[#allocation2] sm:$0xff] %vm894_vm6, %v892_v57  ;;  %v885_v61 = vsel %vm884_vm11, %v882_v59, %v879_v58 }
 0x649   :  { %v887_v62 = vadd.f32 %v885_v61, %v855_v60 }
 0x64b   :  { %v889_v63 = vsel %vm857_vm12, %v853_v34, %v887_v62 }
 0x64c   :  { %v891_v0 = vmax.f32 %v889_v63, 1e-07 }
 0x64e   :  { %v893_v1 = vmin.f32 %v891_v0, 10000000.0 }
 0x650   :  { %896 = vst.msk [vmem:[#allocation2 + $0x8] sm:$0xff] %vm894_vm6, %v893_v1 }
 0x651   :  { %951 = dma.vmem_to_hbm [thread:$0]  %s944_s13, 512, %s946_s2, [#allocation3], %s1090_s9, %s1090_s9, %s1091_s6  }
 0x652   :  { %1086 = dma.done.wait [#allocation3], 512  }
 0x653   :  { %1087 = vsyncadd [#allocation3], 4294966784 }
 0x654   :  { %956 = vsyncpa [#allocation3], 1 }

</bundles_post_ra>
